<compile_context>
chip_gen: v6e
topology: v6e:2x2x1
jax: 0.10.0
libtpu: 0.0.40
codegen_flags: <defaults>
</compile_context>

<pallas_src>
import functools

import jax
import jax.numpy as jnp
from jax.experimental import pallas as pl
from jax.experimental.pallas import tpu as pltpu


def _round_up(x, m):
    return (x + m - 1) // m * m


def _cdiv(a, b):
    return -(-a // b)


def _maybe_pad2d(a, shape):
    """Zero-pad a 2-D array to `shape`; no copy if already that shape."""
    if tuple(a.shape) == tuple(shape):
        return a
    return jnp.zeros(shape, a.dtype).at[:a.shape[0], :a.shape[1]].set(a)


def _vmem_physical_bytes():
    try:
        info = pltpu.get_tpu_info()
        for attr in ("vmem_capacity_bytes", "vmem_size_bytes", "vmem_bytes"):
            v = getattr(info, attr, None)
            if v:
                return int(v)
    except Exception:
        pass
    return 128 * 1024 * 1024  # v5e / v6e default


def _vmem_estimate(tm, tk, d_pad, in_isize, out_isize):
    """Conservative VMEM footprint (bytes) for one pipelined configuration."""
    x_tile = 2 * tm * d_pad * in_isize           # double-buffered input rows
    o_tile = 2 * tm * d_pad * out_isize          # double-buffered output rows
    w1c = 2 * d_pad * tk * in_isize              # w1 chunk (double-buffered)
    w2c = 2 * tk * d_pad * in_isize              # w2 chunk (double-buffered)
    b1c = 2 * 8 * tk * 4                         # b1 chunk (sublane-padded)
    vecs = 3 * 2 * 8 * d_pad * 4                 # b2 / gamma / beta
    acc = 2 * tm * d_pad * 4                     # f32 accumulator + epilogue tmp
    h = tm * tk * (4 + in_isize)                 # ReLU intermediate (+ cast)
    return x_tile + o_tile + w1c + w2c + b1c + vecs + acc + h


def _select_tiles(rows, d_pad, dff_pad, in_isize, out_isize, budget, tm_max=512):
    """Pick (tm, tk).  tk == dff_pad means the weight-resident fast path."""
    # Row tiles: minimize padding waste and keep >=2 tiles so the parallel row
    # axis can be sharded across TensorCores (v7x megacore).
    n_tiles = max(_cdiv(rows, tm_max), 2 if rows >= 16 else 1)
    tm0 = _round_up(_cdiv(rows, n_tiles), 8)

    def fits(tm, tk):
        return _vmem_estimate(tm, tk, d_pad, in_isize, out_isize) <= budget

    # 1) Weight-resident: constant weight block index over the whole grid ->
    #    weights DMA'd from HBM exactly once, no accumulator RMW.
    tm_floor = min(tm0, 128)
    tm = tm0
    while True:
        if fits(tm, dff_pad):
            return tm, dff_pad
        if tm <= tm_floor:
            break
        tm = max(tm_floor, _round_up(tm // 2, 8))

    # 2) Streamed weights: prefer the largest row tile first (weight HBM
    #    traffic scales with the number of row tiles), then the largest dff
    #    chunk that fits (fewer accumulator read-modify-writes).
    tk_cands = [t for t in range(dff_pad, 0, -128) if dff_pad % t == 0]
    tm = tm0
    while True:
        for tk in tk_cands:
            if fits(tm, tk):
                return tm, tk
        if tm <= 8:
            return 8, tk_cands[-1]
        tm = max(8, _round_up(tm // 2, 8))


def _residual_layernorm(x_f32, y_f32, b2, g, beta, eps, d_model):
    # Padded feature lanes of r are exactly zero (zero-padded x, w2 columns,
    # b2), so sums over the padded lane dim only see the real d_model features.
    r = x_f32 + y_f32 + b2
    inv_d = jnp.float32(1.0 / d_model)
    s = jnp.sum(r, axis=-1, keepdims=True)
    s2 = jnp.sum(r * r, axis=-1, keepdims=True)
    mean = s * inv_d
    var = s2 * inv_d - mean * mean
    inv = jax.lax.rsqrt(var + eps)
    return (r - mean) * inv * g + beta


def _mlp_ln_kernel_resident(x_ref, w1_ref, b1_ref, w2_ref, b2_ref, g_ref,
                            beta_ref, o_ref, *, eps, d_model):
    """One row tile; full dff resident in VMEM (single pass, no accumulator)."""
    xm = x_ref[...].astype(w1_ref.dtype)
    h = jnp.dot(xm, w1_ref[...], preferred_element_type=jnp.float32)
    h = jnp.maximum(h + b1_ref[...], 0.0)
    y = jnp.dot(h.astype(w2_ref.dtype), w2_ref[...],
                preferred_element_type=jnp.float32)
    out = _residual_layernorm(x_ref[...].astype(jnp.float32), y,
                              b2_ref[...], g_ref[...], beta_ref[...],
                              eps, d_model)
    o_ref[...] = out.astype(o_ref.dtype)


def _mlp_ln_kernel_streamed(x_ref, w1_ref, b1_ref, w2_ref, b2_ref, g_ref,
                            beta_ref, o_ref, acc_ref, *, eps, d_model):
    """One row tile x one dff chunk; dff is the inner 'arbitrary' axis."""
    k = pl.program_id(1)

    @pl.when(k == 0)
    def _():
        acc_ref[...] = jnp.zeros_like(acc_ref)

    xm = x_ref[...].astype(w1_ref.dtype)
    h = jnp.dot(xm, w1_ref[...], preferred_element_type=jnp.float32)
    h = jnp.maximum(h + b1_ref[...], 0.0)
    acc_ref[...] += jnp.dot(h.astype(w2_ref.dtype), w2_ref[...],
                            preferred_element_type=jnp.float32)

    @pl.when(k == pl.num_programs(1) - 1)
    def _():
        out = _residual_layernorm(x_ref[...].astype(jnp.float32), acc_ref[...],
                                  b2_ref[...], g_ref[...], beta_ref[...],
                                  eps, d_model)
        o_ref[...] = out.astype(o_ref.dtype)


def make_mlp_layernorm(w1, b1, w2, b2, gamma, beta, *, eps=1e-5,
                       compute_dtype=None, tm_max=512):
    """Pads / casts the parameters ONCE; returns a jitted `apply(x) -> y`.

    compute_dtype: dtype for the MXU matmuls (e.g. jnp.bfloat16).  None keeps
    the weights' own dtype.  Bias add, residual and LayerNorm are always f32.
    """
    d_model, dff = w1.shape
    d_pad = _round_up(d_model, 128)
    dff_pad = _round_up(dff, 128)

    wdt = jnp.dtype(compute_dtype) if compute_dtype is not None else w1.dtype

    # Parameter padding hoisted out of the per-call path (no-op when aligned).
    w1p = _maybe_pad2d(w1.astype(wdt), (d_pad, dff_pad))
    w2p = _maybe_pad2d(w2.astype(wdt), (dff_pad, d_pad))
    b1p = _maybe_pad2d(b1.astype(jnp.float32).reshape(1, dff), (1, dff_pad))
    b2p = _maybe_pad2d(b2.astype(jnp.float32).reshape(1, d_model), (1, d_pad))
    gp = _maybe_pad2d(gamma.astype(jnp.float32).reshape(1, d_model), (1, d_pad))
    bp = _maybe_pad2d(beta.astype(jnp.float32).reshape(1, d_model), (1, d_pad))

    phys = _vmem_physical_bytes()
    budget = (phys * 3) // 4          # ~96 MiB on v5e/v6e, ~48 MiB on v7x
    w_isize = jnp.dtype(wdt).itemsize

    def apply(x):
        B, S, d = x.shape
        assert d == d_model, "x feature dim must equal d_model"
        rows = B * S
        x_isize = jnp.dtype(x.dtype).itemsize

        tm, tk = _select_tiles(rows, d_pad, dff_pad,
                               max(w_isize, x_isize), x_isize, budget,
                               tm_max=tm_max)
        rows_pad = _round_up(rows, tm)
        n_row_tiles = rows_pad // tm
        resident = (tk == dff_pad)

        # Per-call padding of x only when actually needed.
        x2 = _maybe_pad2d(x.reshape(rows, d_model), (rows_pad, d_pad))

        weight_passes = 1 if resident else n_row_tiles
        w_bytes = (w1p.size + w2p.size) * w_isize
        cost = pl.CostEstimate(
            flops=int(4 * rows_pad * d_pad * dff_pad),
            transcendentals=int(rows_pad),
            bytes_accessed=int(x2.size * x_isize
                               + rows_pad * d_pad * x_isize
                               + weight_passes * w_bytes))

        compiler_params = pltpu.CompilerParams(
            dimension_semantics=(("parallel",) if resident
                                 else ("parallel", "arbitrary")),
            vmem_limit_bytes=int(budget))

        if resident:
            grid = (n_row_tiles,)
            in_specs = [
                pl.BlockSpec((tm, d_pad), lambda i: (i, 0)),        # x rows
                pl.BlockSpec((d_pad, dff_pad), lambda i: (0, 0)),   # w1 (resident)
                pl.BlockSpec((1, dff_pad), lambda i: (0, 0)),       # b1
                pl.BlockSpec((dff_pad, d_pad), lambda i: (0, 0)),   # w2 (resident)
                pl.BlockSpec((1, d_pad), lambda i: (0, 0)),         # b2
                pl.BlockSpec((1, d_pad), lambda i: (0, 0)),         # gamma
                pl.BlockSpec((1, d_pad), lambda i: (0, 0)),         # beta
            ]
            out_specs = pl.BlockSpec((tm, d_pad), lambda i: (i, 0))
            scratch = []
            kern = functools.partial(_mlp_ln_kernel_resident,
                                     eps=eps, d_model=d_model)
        else:
            grid = (n_row_tiles, dff_pad // tk)
            in_specs = [
                pl.BlockSpec((tm, d_pad), lambda i, k: (i, 0)),     # x rows
                pl.BlockSpec((d_pad, tk), lambda i, k: (0, k)),     # w1 chunk
                pl.BlockSpec((1, tk), lambda i, k: (0, k)),         # b1 chunk
                pl.BlockSpec((tk, d_pad), lambda i, k: (k, 0)),     # w2 chunk
                pl.BlockSpec((1, d_pad), lambda i, k: (0, 0)),      # b2
                pl.BlockSpec((1, d_pad), lambda i, k: (0, 0)),      # gamma
                pl.BlockSpec((1, d_pad), lambda i, k: (0, 0)),      # beta
            ]
            out_specs = pl.BlockSpec((tm, d_pad), lambda i, k: (i, 0))
            scratch = [pltpu.VMEM((tm, d_pad), jnp.float32)]
            kern = functools.partial(_mlp_ln_kernel_streamed,
                                     eps=eps, d_model=d_model)

        out = pl.pallas_call(
            kern,
            out_shape=jax.ShapeDtypeStruct((rows_pad, d_pad), x.dtype),
            grid_spec=pltpu.PrefetchScalarGridSpec(
                num_scalar_prefetch=0,
                grid=grid,
                in_specs=in_specs,
                out_specs=out_specs,
                scratch_shapes=scratch),
            compiler_params=compiler_params,
            cost_estimate=cost,
        )(x2, w1p, b1p, w2p, b2p, gp, bp)

        if rows_pad != rows or d_pad != d_model:
            out = out[:rows, :d_model]
        return out.reshape(B, S, d_model)

    return jax.jit(apply)


def mlp_layernorm(x, w1, b1, w2, b2, gamma, beta, *, eps=1e-5,
                  compute_dtype=None):
    """Convenience one-shot API (params padded per call if unaligned)."""
    return make_mlp_layernorm(w1, b1, w2, b2, gamma, beta, eps=eps,
                              compute_dtype=compute_dtype)(x)


def reference(x, w1, b1, w2, b2, gamma, beta, eps=1e-5):
    h = jnp.maximum(x @ w1 + b1, 0.0)
    y = h @ w2 + b2
    r = x + y
    mean = jnp.mean(r, axis=-1, keepdims=True)
    var = jnp.mean((r - mean) ** 2, axis=-1, keepdims=True)
    return (r - mean) * jax.lax.rsqrt(var + eps) * gamma + beta


if __name__ == "__main__":
    # Small shapes consistent with the module's forward.
    batch, seq, d_model, dff = 2, 8, 32, 64

    key = jax.random.PRNGKey(0)
    kx, kw1, kb1, kw2, kb2 = jax.random.split(key, 5)

    x = jax.random.normal(kx, (batch, seq, d_model), dtype=jnp.float32)

    # Deterministic parameter init (nn.Linear-style uniform bounds).
    bound1 = 1.0 / (d_model ** 0.5)
    bound2 = 1.0 / (dff ** 0.5)
    w1 = jax.random.uniform(kw1, (d_model, dff), jnp.float32, -bound1, bound1)
    b1 = jax.random.uniform(kb1, (dff,), jnp.float32, -bound1, bound1)
    w2 = jax.random.uniform(kw2, (dff, d_model), jnp.float32, -bound2, bound2)
    b2 = jax.random.uniform(kb2, (d_model,), jnp.float32, -bound2, bound2)
    gamma = jnp.ones((d_model,), jnp.float32)
    beta = jnp.zeros((d_model,), jnp.float32)

    # TODO(synk): Dropout omitted (inference mode / p=0); training-mode dropout
    # would need pltpu.prng_seed / prng_random_bits masking in-kernel.

    ref = reference(x, w1, b1, w2, b2, gamma, beta)

    # f32 path (matches the module's default precision).
    apply_f32 = make_mlp_layernorm(w1, b1, w2, b2, gamma, beta)
    out = jax.block_until_ready(apply_f32(x))
    assert out.shape == (batch, seq, d_model)
    assert jnp.allclose(out, ref, atol=1e-4, rtol=1e-4), float(
        jnp.max(jnp.abs(out - ref)))

    # bf16 compute path (native MXU dtype); looser tolerance.
    apply_bf16 = make_mlp_layernorm(w1, b1, w2, b2, gamma, beta,
                                    compute_dtype=jnp.bfloat16)
    out_bf = jax.block_until_ready(apply_bf16(x))
    assert jnp.allclose(out_bf, ref, atol=1e-1, rtol=1e-1), float(
        jnp.max(jnp.abs(out_bf - ref)))

    print("KERNEL_OK")
</pallas_src>

<mosaic_0001>
module attributes {stable_mosaic.version = 11 : i64} {
  func.func @_mlp_ln_kernel_resident(%arg0: i32, %arg1: memref<8x128xf32, #tpu.memory_space<vmem>>, %arg2: memref<128x128xf32, #tpu.memory_space<vmem>>, %arg3: memref<1x128xf32, #tpu.memory_space<vmem>>, %arg4: memref<128x128xf32, #tpu.memory_space<vmem>>, %arg5: memref<1x128xf32, #tpu.memory_space<vmem>>, %arg6: memref<1x128xf32, #tpu.memory_space<vmem>>, %arg7: memref<1x128xf32, #tpu.memory_space<vmem>>, %arg8: memref<8x128xf32, #tpu.memory_space<vmem>>) attributes {dimension_semantics = [#tpu.dimension_semantics<parallel>], iteration_bounds = array<i64: 2>, scalar_prefetch = 0 : i64, scratch_operands = 0 : i64, tpu.core_type = #tpu.core_type<tc>, window_params = [{transform_indices = @transform_0, window_bounds = array<i64: 8, 128>}, {pipeline_mode = #tpu.pipeline_mode<synchronous>, transform_indices = @transform_1, window_bounds = array<i64: 128, 128>}, {pipeline_mode = #tpu.pipeline_mode<synchronous>, transform_indices = @transform_2, window_bounds = array<i64: 1, 128>}, {pipeline_mode = #tpu.pipeline_mode<synchronous>, transform_indices = @transform_3, window_bounds = array<i64: 128, 128>}, {pipeline_mode = #tpu.pipeline_mode<synchronous>, transform_indices = @transform_4, window_bounds = array<i64: 1, 128>}, {pipeline_mode = #tpu.pipeline_mode<synchronous>, transform_indices = @transform_5, window_bounds = array<i64: 1, 128>}, {pipeline_mode = #tpu.pipeline_mode<synchronous>, transform_indices = @transform_6, window_bounds = array<i64: 1, 128>}, {transform_indices = @transform_7, window_bounds = array<i64: 8, 128>}]} {
    %c0 = arith.constant 0 : index
    %c0_0 = arith.constant 0 : index
    %0 = vector.load %arg1[%c0, %c0_0] : memref<8x128xf32, #tpu.memory_space<vmem>>, vector<8x128xf32>
    %c0_1 = arith.constant 0 : index
    %c0_2 = arith.constant 0 : index
    %1 = vector.load %arg2[%c0_1, %c0_2] : memref<128x128xf32, #tpu.memory_space<vmem>>, vector<128x128xf32>
    %cst = arith.constant dense<0.000000e+00> : vector<8x128xf32>
    %2 = tpu.matmul %0, %1, %cst {dimension_numbers = #tpu.dot_dimension_numbers<[1], [0], [0], [1], [0, 0, 1, 1], [], []>} : vector<8x128xf32>, vector<128x128xf32>, vector<8x128xf32> -> vector<8x128xf32>
    %c0_3 = arith.constant 0 : index
    %c0_4 = arith.constant 0 : index
    %3 = vector.load %arg3[%c0_3, %c0_4] : memref<1x128xf32, #tpu.memory_space<vmem>>, vector<1x128xf32>
    %4 = vector.broadcast %3 : vector<1x128xf32> to vector<8x128xf32>
    %5 = arith.addf %2, %4 : vector<8x128xf32>
    %cst_5 = arith.constant 0.000000e+00 : f32
    %6 = vector.broadcast %cst_5 : f32 to vector<8x128xf32>
    %7 = arith.maximumf %5, %6 : vector<8x128xf32>
    %c0_6 = arith.constant 0 : index
    %c0_7 = arith.constant 0 : index
    %8 = vector.load %arg4[%c0_6, %c0_7] : memref<128x128xf32, #tpu.memory_space<vmem>>, vector<128x128xf32>
    %cst_8 = arith.constant dense<0.000000e+00> : vector<8x128xf32>
    %9 = tpu.matmul %7, %8, %cst_8 {dimension_numbers = #tpu.dot_dimension_numbers<[1], [0], [0], [1], [0, 0, 1, 1], [], []>} : vector<8x128xf32>, vector<128x128xf32>, vector<8x128xf32> -> vector<8x128xf32>
    %c0_9 = arith.constant 0 : index
    %c0_10 = arith.constant 0 : index
    %10 = vector.load %arg1[%c0_9, %c0_10] : memref<8x128xf32, #tpu.memory_space<vmem>>, vector<8x128xf32>
    %c0_11 = arith.constant 0 : index
    %c0_12 = arith.constant 0 : index
    %11 = vector.load %arg5[%c0_11, %c0_12] : memref<1x128xf32, #tpu.memory_space<vmem>>, vector<1x128xf32>
    %c0_13 = arith.constant 0 : index
    %c0_14 = arith.constant 0 : index
    %12 = vector.load %arg6[%c0_13, %c0_14] : memref<1x128xf32, #tpu.memory_space<vmem>>, vector<1x128xf32>
    %c0_15 = arith.constant 0 : index
    %c0_16 = arith.constant 0 : index
    %13 = vector.load %arg7[%c0_15, %c0_16] : memref<1x128xf32, #tpu.memory_space<vmem>>, vector<1x128xf32>
    %14 = arith.addf %10, %9 : vector<8x128xf32>
    %15 = vector.broadcast %11 : vector<1x128xf32> to vector<8x128xf32>
    %16 = arith.addf %14, %15 : vector<8x128xf32>
    %cst_17 = arith.constant dense<0.000000e+00> : vector<8xf32>
    %17 = vector.multi_reduction <add>, %16, %cst_17 [1] : vector<8x128xf32> to vector<8xf32>
    %18 = vector.shape_cast %17 : vector<8xf32> to vector<8x1xf32>
    %19 = arith.mulf %16, %16 : vector<8x128xf32>
    %cst_18 = arith.constant dense<0.000000e+00> : vector<8xf32>
    %20 = vector.multi_reduction <add>, %19, %cst_18 [1] : vector<8x128xf32> to vector<8xf32>
    %21 = vector.shape_cast %20 : vector<8xf32> to vector<8x1xf32>
    %cst_19 = arith.constant 3.125000e-02 : f32
    %22 = vector.broadcast %cst_19 : f32 to vector<8x1xf32>
    %23 = arith.mulf %18, %22 : vector<8x1xf32>
    %cst_20 = arith.constant 3.125000e-02 : f32
    %24 = vector.broadcast %cst_20 : f32 to vector<8x1xf32>
    %25 = arith.mulf %21, %24 : vector<8x1xf32>
    %26 = arith.mulf %23, %23 : vector<8x1xf32>
    %27 = arith.subf %25, %26 : vector<8x1xf32>
    %cst_21 = arith.constant 9.99999974E-6 : f32
    %28 = vector.broadcast %cst_21 : f32 to vector<8x1xf32>
    %29 = arith.addf %27, %28 : vector<8x1xf32>
    %30 = math.rsqrt %29 : vector<8x1xf32>
    %31 = vector.broadcast %23 : vector<8x1xf32> to vector<8x128xf32>
    %32 = arith.subf %16, %31 : vector<8x128xf32>
    %33 = vector.broadcast %30 : vector<8x1xf32> to vector<8x128xf32>
    %34 = arith.mulf %32, %33 : vector<8x128xf32>
    %35 = vector.broadcast %12 : vector<1x128xf32> to vector<8x128xf32>
    %36 = arith.mulf %34, %35 : vector<8x128xf32>
    %37 = vector.broadcast %13 : vector<1x128xf32> to vector<8x128xf32>
    %38 = arith.addf %36, %37 : vector<8x128xf32>
    %c0_22 = arith.constant 0 : index
    %c0_23 = arith.constant 0 : index
    %39 = vector.load %arg8[%c0_22, %c0_23] : memref<8x128xf32, #tpu.memory_space<vmem>>, vector<8x128xf32>
    tpu.vector_store %arg8[%c0_22, %c0_23], %38 {strides = array<i32>} : memref<8x128xf32, #tpu.memory_space<vmem>>, vector<8x128xf32>,
    return
  }
  func.func @transform_0(%arg0: i32) -> (i32, i32) {
    %c0_i32 = arith.constant 0 : i32
    %c0_i32_0 = arith.constant 0 : i32
    return %arg0, %c0_i32 : i32, i32
  }
  func.func @transform_1(%arg0: i32) -> (i32, i32) {
    %c0_i32 = arith.constant 0 : i32
    %c0_i32_0 = arith.constant 0 : i32
    %c0_i32_1 = arith.constant 0 : i32
    return %c0_i32, %c0_i32_0 : i32, i32
  }
  func.func @transform_2(%arg0: i32) -> (i32, i32) {
    %c0_i32 = arith.constant 0 : i32
    %c0_i32_0 = arith.constant 0 : i32
    %c0_i32_1 = arith.constant 0 : i32
    return %c0_i32, %c0_i32_0 : i32, i32
  }
  func.func @transform_3(%arg0: i32) -> (i32, i32) {
    %c0_i32 = arith.constant 0 : i32
    %c0_i32_0 = arith.constant 0 : i32
    %c0_i32_1 = arith.constant 0 : i32
    return %c0_i32, %c0_i32_0 : i32, i32
  }
  func.func @transform_4(%arg0: i32) -> (i32, i32) {
    %c0_i32 = arith.constant 0 : i32
    %c0_i32_0 = arith.constant 0 : i32
    %c0_i32_1 = arith.constant 0 : i32
    return %c0_i32, %c0_i32_0 : i32, i32
  }
  func.func @transform_5(%arg0: i32) -> (i32, i32) {
    %c0_i32 = arith.constant 0 : i32
    %c0_i32_0 = arith.constant 0 : i32
    %c0_i32_1 = arith.constant 0 : i32
    return %c0_i32, %c0_i32_0 : i32, i32
  }
  func.func @transform_6(%arg0: i32) -> (i32, i32) {
    %c0_i32 = arith.constant 0 : i32
    %c0_i32_0 = arith.constant 0 : i32
    %c0_i32_1 = arith.constant 0 : i32
    return %c0_i32, %c0_i32_0 : i32, i32
  }
  func.func @transform_7(%arg0: i32) -> (i32, i32) {
    %c0_i32 = arith.constant 0 : i32
    %c0_i32_0 = arith.constant 0 : i32
    return %arg0, %c0_i32 : i32, i32
  }
}

</mosaic_0001>

<bundles_post_ra>
// kernel: apply.1
= control target key start
LH: loop header
LB: loop body
LE: loop exit
PB: predicated region body
PF: predicated region fallthrough
CT: control target
= control target key end

     0   :  { %12 = vsyncpa [#allocation3], 0  ;;  %s984_s0 = inlined_call_operand.vmem [shape: f32[16,128], index: 0, kind: input, shape index: {}]   ;;  %s985_s1 = inlined_call_operand.hbm [shape: f32[128,128], index: 1, kind: input, shape index: {}]   ;;  %s986_s2 = inlined_call_operand.vmem [shape: f32[1,128], index: 2, kind: input, shape index: {}]   ;;  %s987_s3 = inlined_call_operand.hbm [shape: f32[128,128], index: 3, kind: input, shape index: {}]   ;;  %s988_s4 = inlined_call_operand.vmem [shape: f32[1,128], index: 4, kind: input, shape index: {}]   ;;  %s989_s5 = inlined_call_operand.vmem [shape: f32[1,128], index: 5, kind: input, shape index: {}]   ;;  %s990_s6 = inlined_call_operand.vmem [shape: f32[1,128], index: 6, kind: input, shape index: {}]   ;;  %s991_s7 = inlined_call_operand.vmem [shape: f32[16,128], index: 7, kind: output, shape index: {}]  }
   0x1   :  { %13 = vsyncpa [#allocation5], 0  ;;  %s869_s24 = smov 0  }
   0x2 LB: > { %s875_s25 = sadd.s32 4294967295, %s821_s24   ;;  %p601_p0 = scmp.ge.s32.totalorder %s821_s24, 1  ;;  %s821_s24 = sphi %s869_s24, %s19_s24  }
   0x3   : > { %p202_p1 = scmp.lt.s32.totalorder %s821_s24, 3  ;;  %s823_s26 = smov [#allocation2]  }
   0x4   : > { %s214_s27 = sshll.u32 %s823_s26, 4  ;;  %p735_p3 = scmp.eq.s32.totalorder %s875_s25, 0  ;;  %s215_s27 = int_to_ptr.vmem [resolvable:$true] %s214_s27 }
   0x5   : > { %p879_p2 = pnand %p601_p0, %p202_p1  ;;  %s824_s29 = smov [#allocation4]  }
   0x6   : > { %s230_s30 = sshll.u32 %s824_s29, 4  ;;  %s766_s9 = scalar_lea.vmem %s215_s27, 2048  ;;  %s231_s30 = int_to_ptr.vmem [resolvable:$true] %s230_s30 }
   0x7   : > { %p728_p4 = pneg %p879_p2  ;;  %p767_p7 = scmp.ne.s32.totalorder %s215_s27, %s766_s9 }
   0x8   : > { %p774_p10 = scmp.lt.s32.totalorder %s215_s27, %s215_s27  ;;  %p775_p11 = scmp.lt.s32.totalorder %s766_s9, %s766_s9 }
   0x9   : > { %p888_p5 = pnand %p735_p3, %p728_p4 }
   0xa   : > { %p776_p12 = por %p775_p11, %p774_p10 }
   0xb   : > { %p757_p6 = pneg %p888_p5 }
   0xd   : > { %p769_p8 = pnand %p767_p7, %p757_p6 }
   0xf   : > { %p770_p9 = pneg %p769_p8 }
  0x11   : > { %p777_p13 = pnand %p776_p12, %p770_p9 }
  0x13   : > { %780 = shalt.err (!%p777_p13)
}
  0x14   : > { %s825_s10 = smov 128   ;;  %s826_s11 = smov 8  }
  0x15   : > { %731 = dma.hbm_to_vmem [thread:$0]  (!%p888_p5), %s985_s1, 2048, %s215_s27, [#allocation3], %s825_s10, %s825_s10, %s826_s11  }
  0x16   : > { %s792_s14 = scalar_lea.vmem %s231_s30, 2048  ;;  %p800_p7 = scmp.lt.s32.totalorder %s231_s30, %s231_s30 }
  0x17   : > { %p793_p0 = scmp.ne.s32.totalorder %s231_s30, %s792_s14  ;;  %p801_p8 = scmp.lt.s32.totalorder %s792_s14, %s792_s14 }
  0x19   : > { %p795_p1 = pnand %p793_p0, %p757_p6  ;;  %p802_p10 = por %p801_p8, %p800_p7 }
  0x1b   : > { %p796_p4 = pneg %p795_p1 }
  0x1d   : > { %p803_p9 = pnand %p802_p10, %p796_p4 }
  0x1f   : > { %806 = shalt.err (!%p803_p9)
}
  0x20   : > { %734 = dma.hbm_to_vmem [thread:$0]  (!%p888_p5), %s987_s3, 2048, %s231_s30, [#allocation5], %s825_s10, %s825_s10, %s826_s11  }
  0x21   : > { %262 = sbr.rel (%p879_p2) target bundleno = 638 (0x27e), region = 48 }
  0x26   : > { %812 = dma.done.wait (%p735_p3), [#allocation3], 2048  }
  0x27   : > { %814 = vsyncadd (%p735_p3), [#allocation3], 4294965248 }
  0x28   : > { %816 = dma.done.wait (%p735_p3), [#allocation5], 2048  }
  0x29   : > { %818 = vsyncadd (%p735_p3), [#allocation5], 4294965248  ;;  %v827_v0 = vmov 0.0   ;;  %vm828_vm0 = vmmov 0   ;;  %v320_v1 = vld [vmem:[#allocation2 + $0x78] sm:$0xff]  ;;  %v319_v2 = vld [vmem:[#allocation2 + $0x70] sm:$0xff] }
  0x2a   : > { %650 = vmatprep.subr.mxu0 %v827_v0  ;;  %682 = vmatprep.mubr.msk.f32.mxu0 %vm828_vm0, %v827_v0  ;;  %v318_v3 = vld [vmem:[#allocation2 + $0x68] sm:$0xff]  ;;  %v317_v4 = vld [vmem:[#allocation2 + $0x60] sm:$0xff]  ;;  %v414_v5 = vld [vmem:[#allocation4 + $0x78] sm:$0xff]  ;;  %p296_p2 = scmp.lt.s32.totalorder %s875_s25, 1 }
  0x2b   : > { %685 = vmatprep.subr.mxu1 %v827_v0  ;;  %717 = vmatprep.mubr.msk.f32.mxu1 %vm828_vm0, %v827_v0  ;;  %v316_v6 = vld [vmem:[#allocation2 + $0x58] sm:$0xff]  ;;  %v413_v7 = vld [vmem:[#allocation4 + $0x70] sm:$0xff]  ;;  %v412_v8 = vld [vmem:[#allocation4 + $0x68] sm:$0xff] }
  0x2c   : > { %651 = vmatpush3.msra.mxu0 %v320_v1  ;;  %686 = vmatpush3.msra.mxu1 %v414_v5  ;;  %v315_v9 = vld [vmem:[#allocation2 + $0x50] sm:$0xff]  ;;  %v411_v10 = vld [vmem:[#allocation4 + $0x60] sm:$0xff]  ;;  %v314_v11 = vld [vmem:[#allocation2 + $0x48] sm:$0xff]  ;;  %s995_s25 = smov (!%p296_p2, %s875_s25), 1 }
  0x2d   : > { %652 = vmatprep.subr.mxu0 %v827_v0  ;;  %687 = vmatprep.subr.mxu1 %v827_v0  ;;  %v410_v12 = vld [vmem:[#allocation4 + $0x58] sm:$0xff]  ;;  %v313_v13 = vld [vmem:[#allocation2 + $0x40] sm:$0xff]  ;;  %v409_v14 = vld [vmem:[#allocation4 + $0x50] sm:$0xff]  ;;  %s608_s17 = sshll.u32 %s995_s25, 3 }
  0x2e   : > { %653 = vmatpush3.msra.mxu0 %v319_v2  ;;  %688 = vmatpush3.msra.mxu1 %v413_v7  ;;  %v312_v15 = vld [vmem:[#allocation2 + $0x38] sm:$0xff]  ;;  %v408_v16 = vld [vmem:[#allocation4 + $0x48] sm:$0xff]  ;;  %v311_v17 = vld [vmem:[#allocation2 + $0x30] sm:$0xff]  ;;  %s299_s20 = scalar_lea.vmem %s984_s0, %s608_s17  ;;  %s303_s10 = scalar_lea.vmem %s991_s7, %s608_s17 }
  0x2f   : > { %654 = vmatprep.subr.mxu0 %v827_v0  ;;  %689 = vmatprep.subr.mxu1 %v827_v0  ;;  %v407_v18 = vld [vmem:[#allocation4 + $0x40] sm:$0xff]  ;;  %v310_v19 = vld [vmem:[#allocation2 + $0x28] sm:$0xff]  ;;  %v406_v20 = vld [vmem:[#allocation4 + $0x38] sm:$0xff] }
  0x30   : > { %655 = vmatpush3.msra.mxu0 %v318_v3  ;;  %690 = vmatpush3.msra.mxu1 %v412_v8  ;;  %v309_v21 = vld [vmem:[#allocation2 + $0x20] sm:$0xff]  ;;  %v405_v22 = vld [vmem:[#allocation4 + $0x30] sm:$0xff]  ;;  %v308_v23 = vld [vmem:[#allocation2 + $0x18] sm:$0xff] }
  0x31   : > { %656 = vmatprep.subr.mxu0 %v827_v0  ;;  %691 = vmatprep.subr.mxu1 %v827_v0  ;;  %v404_v24 = vld [vmem:[#allocation4 + $0x28] sm:$0xff]  ;;  %v307_v25 = vld [vmem:[#allocation2 + $0x10] sm:$0xff]  ;;  %v403_v26 = vld [vmem:[#allocation4 + $0x20] sm:$0xff] }
  0x32   : > { %657 = vmatpush3.msra.mxu0 %v317_v4  ;;  %692 = vmatpush3.msra.mxu1 %v411_v10  ;;  %v306_v27 = vld [vmem:[#allocation2 + $0x8] sm:$0xff]  ;;  %v402_v28 = vld [vmem:[#allocation4 + $0x18] sm:$0xff]  ;;  %v305_v29 = vld [vmem:[#allocation2] sm:$0xff] }
  0x33   : > { %658 = vmatprep.subr.mxu0 %v827_v0  ;;  %693 = vmatprep.subr.mxu1 %v827_v0  ;;  %v304_v30 = vld [vmem:[%s299_s20] sm:$0xff]  ;;  %v401_v31 = vld [vmem:[#allocation4 + $0x10] sm:$0xff]  ;;  %v400_v32 = vld [vmem:[#allocation4 + $0x8] sm:$0xff] }
  0x34   : > { %659 = vmatpush3.msra.mxu0 %v316_v6  ;;  %694 = vmatpush3.msra.mxu1 %v410_v12  ;;  %v399_v33 = vld [vmem:[#allocation4] sm:$0xff] }
  0x35   : > { %660 = vmatprep.subr.mxu0 %v827_v0  ;;  %695 = vmatprep.subr.mxu1 %v827_v0  ;;  %v610_v34 = vld [vmem:[%s986_s2] ss:$0 sm:$0xff] }
  0x36   : > { %661 = vmatpush3.msra.mxu0 %v315_v9  ;;  %696 = vmatpush3.msra.mxu1 %v409_v14  ;;  %v611_v40 = vld [vmem:[%s988_s4] ss:$0 sm:$0xff] }
  0x37   : > { %662 = vmatprep.subr.mxu0 %v827_v0  ;;  %697 = vmatprep.subr.mxu1 %v827_v0  ;;  %v612_v54 = vld [vmem:[%s989_s5] ss:$0 sm:$0xff] }
  0x38   : > { %663 = vmatpush3.msra.mxu0 %v314_v11  ;;  %698 = vmatpush3.msra.mxu1 %v408_v16  ;;  %v613_v56 = vld [vmem:[%s990_s6] ss:$0 sm:$0xff] }
  0x39   : > { %664 = vmatprep.subr.mxu0 %v827_v0  ;;  %699 = vmatprep.subr.mxu1 %v827_v0 }
  0x3a   : > { %665 = vmatpush3.msra.mxu0 %v313_v13  ;;  %700 = vmatpush3.msra.mxu1 %v407_v18 }
  0x3b   : > { %666 = vmatprep.subr.mxu0 %v827_v0  ;;  %701 = vmatprep.subr.mxu1 %v827_v0 }
  0x3c   : > { %667 = vmatpush3.msra.mxu0 %v312_v15  ;;  %702 = vmatpush3.msra.mxu1 %v406_v20 }
  0x3d   : > { %668 = vmatprep.subr.mxu0 %v827_v0  ;;  %703 = vmatprep.subr.mxu1 %v827_v0 }
  0x3e   : > { %669 = vmatpush3.msra.mxu0 %v311_v17  ;;  %704 = vmatpush3.msra.mxu1 %v405_v22 }
  0x3f   : > { %670 = vmatprep.subr.mxu0 %v827_v0  ;;  %705 = vmatprep.subr.mxu1 %v827_v0 }
  0x40   : > { %671 = vmatpush3.msra.mxu0 %v310_v19  ;;  %706 = vmatpush3.msra.mxu1 %v404_v24 }
  0x41   : > { %672 = vmatprep.subr.mxu0 %v827_v0  ;;  %707 = vmatprep.subr.mxu1 %v827_v0 }
  0x42   : > { %673 = vmatpush3.msra.mxu0 %v309_v21  ;;  %708 = vmatpush3.msra.mxu1 %v403_v26 }
  0x43   : > { %674 = vmatprep.subr.mxu0 %v827_v0  ;;  %709 = vmatprep.subr.mxu1 %v827_v0 }
  0x44   : > { %675 = vmatpush3.msra.mxu0 %v308_v23  ;;  %710 = vmatpush3.msra.mxu1 %v402_v28 }
  0x45   : > { %676 = vmatprep.subr.mxu0 %v827_v0  ;;  %711 = vmatprep.subr.mxu1 %v827_v0 }
  0x46   : > { %677 = vmatpush3.msra.mxu0 %v307_v25  ;;  %712 = vmatpush3.msra.mxu1 %v401_v31 }
  0x47   : > { %678 = vmatprep.subr.mxu0 %v827_v0  ;;  %713 = vmatprep.subr.mxu1 %v827_v0 }
  0x48   : > { %679 = vmatpush3.msra.mxu0 %v306_v27  ;;  %714 = vmatpush3.msra.mxu1 %v400_v32 }
  0x49   : > { %680 = vmatprep.subr.mxu0 %v827_v0  ;;  %715 = vmatprep.subr.mxu1 %v827_v0 }
  0x4a   : > { %681 = vmatpush3.msra.mxu0 %v305_v29  ;;  %716 = vmatpush3.msra.mxu1 %v399_v33 }
  0x4b   : > { %683 = vmatmul.mubr.f32.vlgmr.msra.gmra.mxu0 %v304_v30 }
 0x10b   : > { %v394_v35 = vpop.f32.mrf.mxu0 }
 0x10c   : > { %v395_v36 = vadd.f32 %v610_v34, %v394_v35 }
 0x10d   : > { %v684_v37 = vpop.f32.mrf.mxu0 }
 0x10e   : > { %v398_v38 = vmax.f32 %v395_v36, 0.0 }
 0x110   : > { %718 = vmatmul.mubr.f32.vlgmr.msra.gmra.mxu1 %v398_v38 }
 0x1d0   : > { %v481_v39 = vpop.f32.mrf.mxu1 }
 0x1d1   : > { %v488_v41 = vadd.f32 %v481_v39, %v304_v30 }
 0x1d2   : > { %v719_v42 = vpop.f32.mrf.mxu1 }
 0x1d3   : > { %v495_v43 = vadd.f32 %v611_v40, %v488_v41 }
 0x1d5   : > { %496 = vadd.xlane.f32.xlu0 %v495_v43  ;;  %v498_v44 = vmul.f32 %v495_v43, %v495_v43 }
 0x1d9   : > { %499 = vadd.xlane.f32.xlu0 %v498_v44 }
 0x25e   : > { %v497_v45 = vpop.xlane.xlu0 %496 }
 0x25f   : > { %v501_v46 = vmul.f32 0.03125, %v497_v45 }
 0x261   : > { %v503_v48 = vmul.f32 %v501_v46, %v501_v46  ;;  %v507_v52 = vsub.f32 %v495_v43, %v501_v46 }
 0x262   : > { %v500_v47 = vpop.xlane.xlu0 %499 }
 0x263   : > { %v502_v49 = vmul.f32 0.03125, %v500_v47 }
 0x265   : > { %v504_v50 = vsub.f32 %v502_v49, %v503_v48 }
 0x267   : > { %v505_v51 = vadd.f32 1e-05, %v504_v50 }
 0x269   : > { %753 = vrsqrt.f32 %v505_v51 }
 0x276   : > { %v754_v53 = vpop.eup %753 }
 0x277   : > { %v508_v55 = vmul.f32 %v754_v53, %v507_v52 }
 0x279   : > { %v515_v57 = vmul.f32 %v612_v54, %v508_v55 }
 0x27b   : > { %v522_v58 = vadd.f32 %v613_v56, %v515_v57 }
 0x27d   : > { %523 = vst [vmem:[%s303_s10] sm:$0xff] %v522_v58 }
 0x27e PF: > { %s19_s24 = sadd.s32 1, %s821_s24  }
 0x27f   : > { %p16_p3 = scmp.ge.s32.totalorder %s19_s24, 4  }
 0x281   :  { %18 = sbr.rel (!%p16_p3) target bundleno = 2 (0x2), region = 87 }
 0x286   :  { %543 = vsyncpa [#allocation3], 1 }
 0x287   :  { %545 = vsyncpa [#allocation3 + $0x1], 1 }
 0x288   :  { %546 = vsyncpa [#allocation5], 1 }

</bundles_post_ra>
